<compile_context>
chip_gen: v5e
topology: v5e:2x2
jax: 0.10.0
libtpu: 0.0.40
codegen_flags: <defaults>
</compile_context>

<pallas_src>
import functools
import math

import jax
import jax.numpy as jnp
from jax.experimental import pallas as pl
from jax.experimental.pallas import tpu as pltpu


def _silog_kernel(pred_ref, gt_ref, out_ref, sum_acc, sum2_acc,
                  *, ratio, ratio2, n_valid):
    t = pl.program_id(0)
    n_tiles = pl.num_programs(0)

    @pl.when(t == 0)
    def _init():
        sum_acc[...] = jnp.zeros_like(sum_acc)
        sum2_acc[...] = jnp.zeros_like(sum2_acc)

    p = pred_ref[...].astype(jnp.float32)
    g = gt_ref[...].astype(jnp.float32)
    r = jnp.float32(ratio)
    # Padded tail elements are 1.0 in both inputs -> log(r) - log(r) == 0
    # exactly, so they contribute nothing to either accumulator.
    log_diff = jnp.log(p * r) - jnp.log(g * r)

    sum_acc[...] += log_diff
    sum2_acc[...] += log_diff * log_diff

    @pl.when(t == n_tiles - 1)
    def _finalize():
        n = jnp.float32(n_valid)
        s = jnp.sum(sum_acc[...])
        s2 = jnp.sum(sum2_acc[...])
        silog1 = s2 / n
        mean_ld = s / n
        silog2 = jnp.float32(ratio2) * mean_ld * mean_ld
        out_ref[0, 0] = jnp.sqrt(silog1 - silog2) * jnp.float32(ratio)


def silog_loss(pred, gt, ratio=10.0, ratio2=0.85, *, tile_rows=1024, lanes=128):
    """SilogLoss forward. pred, gt: any shape (e.g. [B,1,H,W]), positive values.

    Returns a float32 scalar.
    """
    assert pred.shape == gt.shape
    n_valid = int(math.prod(pred.shape))
    rows = pl.cdiv(n_valid, lanes)
    tile_rows = min(int(tile_rows), int(rows))
    padded_rows = pl.cdiv(rows, tile_rows) * tile_rows
    pad = padded_rows * lanes - n_valid

    pflat = pred.reshape(-1)
    gflat = gt.reshape(-1)
    if pad:
        # Pad with 1.0 so log(x*ratio) - log(x*ratio) == 0 exactly for the tail.
        ones_p = jnp.ones((pad,), dtype=pred.dtype)
        ones_g = jnp.ones((pad,), dtype=gt.dtype)
        pflat = jnp.concatenate([pflat, ones_p])
        gflat = jnp.concatenate([gflat, ones_g])
    pflat = pflat.reshape(padded_rows, lanes)
    gflat = gflat.reshape(padded_rows, lanes)
    n_tiles = padded_rows // tile_rows

    kernel = functools.partial(
        _silog_kernel,
        ratio=float(ratio),
        ratio2=float(ratio2),
        n_valid=n_valid,
    )

    out = pl.pallas_call(
        kernel,
        out_shape=jax.ShapeDtypeStruct((1, 1), jnp.float32),
        grid_spec=pltpu.PrefetchScalarGridSpec(
            num_scalar_prefetch=0,
            grid=(n_tiles,),
            in_specs=[
                pl.BlockSpec((tile_rows, lanes), lambda t: (t, 0)),
                pl.BlockSpec((tile_rows, lanes), lambda t: (t, 0)),
            ],
            out_specs=pl.BlockSpec(memory_space=pltpu.MemorySpace.SMEM),
            scratch_shapes=[
                pltpu.VMEM((tile_rows, lanes), jnp.float32),  # running sum(log_diff)
                pltpu.VMEM((tile_rows, lanes), jnp.float32),  # running sum(log_diff^2)
            ],
        ),
        compiler_params=pltpu.CompilerParams(
            dimension_semantics=("arbitrary",)),
    )(pflat, gflat)
    return out[0, 0]


def _silog_ref(pred, gt, ratio=10.0, ratio2=0.85):
    log_diff = jnp.log(pred * ratio) - jnp.log(gt * ratio)
    silog1 = jnp.mean(log_diff ** 2)
    silog2 = ratio2 * jnp.mean(log_diff) ** 2
    return jnp.sqrt(silog1 - silog2) * ratio


if __name__ == "__main__":
    key = jax.random.PRNGKey(0)
    k1, k2, k3, k4 = jax.random.split(key, 4)

    # Main case: [B,1,H,W] depth-style inputs, N divisible by 128 (no padding).
    B, C, H, W = 2, 1, 16, 16
    pred = jax.random.uniform(k1, (B, C, H, W), dtype=jnp.float32,
                              minval=0.1, maxval=2.0)
    gt = jax.random.uniform(k2, (B, C, H, W), dtype=jnp.float32,
                            minval=0.1, maxval=2.0)

    loss = silog_loss(pred, gt, ratio=10.0, ratio2=0.85)
    jax.block_until_ready(loss)
    ref = _silog_ref(pred, gt, ratio=10.0, ratio2=0.85)
    assert jnp.allclose(loss, ref, rtol=1e-5, atol=1e-6), (loss, ref)

    # Ragged case: exercises the constant-1.0 padding path (N % 128 != 0).
    pred2 = jax.random.uniform(k3, (2, 1, 15, 20), dtype=jnp.float32,
                               minval=0.1, maxval=2.0)
    gt2 = jax.random.uniform(k4, (2, 1, 15, 20), dtype=jnp.float32,
                             minval=0.1, maxval=2.0)
    loss2 = silog_loss(pred2, gt2, ratio=10.0, ratio2=0.85)
    jax.block_until_ready(loss2)
    ref2 = _silog_ref(pred2, gt2, ratio=10.0, ratio2=0.85)
    assert jnp.allclose(loss2, ref2, rtol=1e-5, atol=1e-6), (loss2, ref2)

    print("KERNEL_OK")
</pallas_src>

<mosaic_0001>
module attributes {stable_mosaic.version = 11 : i64} {
  func.func @_silog_kernel(%arg0: i32, %arg1: memref<4x128xf32, #tpu.memory_space<vmem>>, %arg2: memref<4x128xf32, #tpu.memory_space<vmem>>, %arg3: memref<1x1xf32, #tpu.memory_space<smem>>, %arg4: memref<4x128xf32, #tpu.memory_space<vmem>>, %arg5: memref<4x128xf32, #tpu.memory_space<vmem>>) attributes {dimension_semantics = [#tpu.dimension_semantics<arbitrary>], iteration_bounds = array<i64: 1>, scalar_prefetch = 0 : i64, scratch_operands = 2 : i64, tpu.core_type = #tpu.core_type<tc>, window_params = [{transform_indices = @transform_0, window_bounds = array<i64: 4, 128>}, {transform_indices = @transform_1, window_bounds = array<i64: 4, 128>}, {transform_indices = @transform_2, window_bounds = array<i64: 1, 1>}]} {
    %c0_i32 = arith.constant 0 : i32
    %0 = arith.cmpi eq, %arg0, %c0_i32 : i32
    %1 = arith.extui %0 : i1 to i32
    %c0_i32_0 = arith.constant 0 : i32
    %2 = arith.cmpi ne, %1, %c0_i32_0 : i32
    scf.if %2 {
      %cst_15 = arith.constant 0.000000e+00 : f32
      %22 = vector.broadcast %cst_15 : f32 to vector<4x128xf32>
      %c0_16 = arith.constant 0 : index
      %c0_17 = arith.constant 0 : index
      %23 = vector.load %arg4[%c0_16, %c0_17] : memref<4x128xf32, #tpu.memory_space<vmem>>, vector<4x128xf32>
      tpu.vector_store %arg4[%c0_16, %c0_17], %22 {strides = array<i32>} : memref<4x128xf32, #tpu.memory_space<vmem>>, vector<4x128xf32>,
      %cst_18 = arith.constant 0.000000e+00 : f32
      %24 = vector.broadcast %cst_18 : f32 to vector<4x128xf32>
      %c0_19 = arith.constant 0 : index
      %c0_20 = arith.constant 0 : index
      %25 = vector.load %arg5[%c0_19, %c0_20] : memref<4x128xf32, #tpu.memory_space<vmem>>, vector<4x128xf32>
      tpu.vector_store %arg5[%c0_19, %c0_20], %24 {strides = array<i32>} : memref<4x128xf32, #tpu.memory_space<vmem>>, vector<4x128xf32>,
    } else {
    }
    %c0 = arith.constant 0 : index
    %c0_1 = arith.constant 0 : index
    %3 = vector.load %arg1[%c0, %c0_1] : memref<4x128xf32, #tpu.memory_space<vmem>>, vector<4x128xf32>
    %c0_2 = arith.constant 0 : index
    %c0_3 = arith.constant 0 : index
    %4 = vector.load %arg2[%c0_2, %c0_3] : memref<4x128xf32, #tpu.memory_space<vmem>>, vector<4x128xf32>
    %cst = arith.constant 1.000000e+01 : f32
    %5 = vector.broadcast %cst : f32 to vector<4x128xf32>
    %6 = arith.mulf %3, %5 : vector<4x128xf32>
    %7 = math.log %6 : vector<4x128xf32>
    %cst_4 = arith.constant 1.000000e+01 : f32
    %8 = vector.broadcast %cst_4 : f32 to vector<4x128xf32>
    %9 = arith.mulf %4, %8 : vector<4x128xf32>
    %10 = math.log %9 : vector<4x128xf32>
    %11 = arith.subf %7, %10 : vector<4x128xf32>
    %c0_5 = arith.constant 0 : index
    %c0_6 = arith.constant 0 : index
    %12 = vector.load %arg4[%c0_5, %c0_6] : memref<4x128xf32, #tpu.memory_space<vmem>>, vector<4x128xf32>
    %13 = arith.addf %12, %11 : vector<4x128xf32>
    %c0_7 = arith.constant 0 : index
    %c0_8 = arith.constant 0 : index
    %14 = vector.load %arg4[%c0_7, %c0_8] : memref<4x128xf32, #tpu.memory_space<vmem>>, vector<4x128xf32>
    tpu.vector_store %arg4[%c0_7, %c0_8], %13 {strides = array<i32>} : memref<4x128xf32, #tpu.memory_space<vmem>>, vector<4x128xf32>,
    %c0_9 = arith.constant 0 : index
    %c0_10 = arith.constant 0 : index
    %15 = vector.load %arg5[%c0_9, %c0_10] : memref<4x128xf32, #tpu.memory_space<vmem>>, vector<4x128xf32>
    %16 = arith.mulf %11, %11 : vector<4x128xf32>
    %17 = arith.addf %15, %16 : vector<4x128xf32>
    %c0_11 = arith.constant 0 : index
    %c0_12 = arith.constant 0 : index
    %18 = vector.load %arg5[%c0_11, %c0_12] : memref<4x128xf32, #tpu.memory_space<vmem>>, vector<4x128xf32>
    tpu.vector_store %arg5[%c0_11, %c0_12], %17 {strides = array<i32>} : memref<4x128xf32, #tpu.memory_space<vmem>>, vector<4x128xf32>,
    %c0_i32_13 = arith.constant 0 : i32
    %19 = arith.cmpi eq, %arg0, %c0_i32_13 : i32
    %20 = arith.extui %19 : i1 to i32
    %c0_i32_14 = arith.constant 0 : i32
    %21 = arith.cmpi ne, %20, %c0_i32_14 : i32
    scf.if %21 {
      %c0_15 = arith.constant 0 : index
      %c0_16 = arith.constant 0 : index
      %22 = vector.load %arg4[%c0_15, %c0_16] : memref<4x128xf32, #tpu.memory_space<vmem>>, vector<4x128xf32>
      %23 = vector.shape_cast %22 : vector<4x128xf32> to vector<1x4x128xf32>
      %cst_17 = arith.constant dense<0.000000e+00> : vector<1xf32>
      %24 = vector.multi_reduction <add>, %23, %cst_17 [1, 2] : vector<1x4x128xf32> to vector<1xf32>
      %25 = vector.shape_cast %24 : vector<1xf32> to vector<1x1x1xf32>
      %26 = vector.extract %25[0, 0, 0] : f32 from vector<1x1x1xf32>
      %c0_18 = arith.constant 0 : index
      %c0_19 = arith.constant 0 : index
      %27 = vector.load %arg5[%c0_18, %c0_19] : memref<4x128xf32, #tpu.memory_space<vmem>>, vector<4x128xf32>
      %28 = vector.shape_cast %27 : vector<4x128xf32> to vector<1x4x128xf32>
      %cst_20 = arith.constant dense<0.000000e+00> : vector<1xf32>
      %29 = vector.multi_reduction <add>, %28, %cst_20 [1, 2] : vector<1x4x128xf32> to vector<1xf32>
      %30 = vector.shape_cast %29 : vector<1xf32> to vector<1x1x1xf32>
      %31 = vector.extract %30[0, 0, 0] : f32 from vector<1x1x1xf32>
      %cst_21 = arith.constant 5.120000e+02 : f32
      %32 = arith.divf %31, %cst_21 : f32
      %cst_22 = arith.constant 5.120000e+02 : f32
      %33 = arith.divf %26, %cst_22 : f32
      %cst_23 = arith.constant 8.500000e-01 : f32
      %34 = arith.mulf %cst_23, %33 : f32
      %35 = arith.mulf %34, %33 : f32
      %36 = arith.subf %32, %35 : f32
      %37 = math.sqrt %36 : f32
      %cst_24 = arith.constant 1.000000e+01 : f32
      %38 = arith.mulf %37, %cst_24 : f32
      %c0_25 = arith.constant 0 : index
      %c0_26 = arith.constant 0 : index
      %39 = memref.load %arg3[%c0_25, %c0_26] : memref<1x1xf32, #tpu.memory_space<smem>>
      memref.store %38, %arg3[%c0_25, %c0_26] : memref<1x1xf32, #tpu.memory_space<smem>>
    } else {
    }
    return
  }
  func.func @transform_0(%arg0: i32) -> (i32, i32) {
    %c0_i32 = arith.constant 0 : i32
    %c0_i32_0 = arith.constant 0 : i32
    return %arg0, %c0_i32 : i32, i32
  }
  func.func @transform_1(%arg0: i32) -> (i32, i32) {
    %c0_i32 = arith.constant 0 : i32
    %c0_i32_0 = arith.constant 0 : i32
    return %arg0, %c0_i32 : i32, i32
  }
  func.func @transform_2(%arg0: i32) -> (i32, i32) {
    %c0_i32 = arith.constant 0 : i32
    %c0_i32_0 = arith.constant 0 : i32
    %c0_i32_1 = arith.constant 0 : i32
    return %c0_i32, %c0_i32_0 : i32, i32
  }
}

</mosaic_0001>

<bundles_post_ra>
// kernel: tpu_custom_call.1
= control target key start
LH: loop header
LB: loop body
LE: loop exit
PB: predicated region body
PF: predicated region fallthrough
CT: control target
= control target key end

     0   :  { %7 = vsyncpa [#allocation5], 0  ;;  %s259_s0 = inlined_call_operand.hbm [shape: f32[4,128], index: 0, kind: input, shape index: {}]   ;;  %s260_s1 = inlined_call_operand.hbm [shape: f32[4,128], index: 1, kind: input, shape index: {}]   ;;  %s261_s2 = inlined_call_operand.hbm [shape: f32[1,1], index: 2, kind: output, shape index: {}]  }
   0x1   :  { %8 = vsyncpa [#allocation8], 0 }
   0x2   :  { %9 = vsyncpa [#allocation6], 0  ;;  %s15_s11 = sshll.u32 %s259_s0, 4  ;;  %s230_s12 = smov [#allocation4]   ;;  %s16_s11 = int_to_ptr.hbm [resolvable:$true] %s15_s11 }
   0x3   :  { %s17_s13 = sshll.u32 %s230_s12, 4  ;;  %s26_s16 = sshll.u32 %s260_s1, 4  ;;  %s18_s13 = int_to_ptr.vmem [resolvable:$true] %s17_s13  ;;  %s27_s16 = int_to_ptr.hbm [resolvable:$true] %s26_s16 }
   0x4   :  { %20 = dma.hbm_to_vmem [thread:$0]  %s16_s11, 64, %s18_s13, [#allocation5]  }
   0x5   :  { %s231_s17 = smov [#allocation7]  }
   0x6   :  { %s28_s18 = sshll.u32 %s231_s17, 4  ;;  %s29_s18 = int_to_ptr.vmem [resolvable:$true] %s28_s18 }
   0x7   :  { %31 = dma.hbm_to_vmem [thread:$0]  %s27_s16, 64, %s29_s18, [#allocation8]  }
   0x8   :  { %224 = dma.done.wait [#allocation5], 64  }
   0x9   :  { %225 = vsyncadd [#allocation5], 4294967232 }
   0xa   :  { %226 = dma.done.wait [#allocation8], 64  }
   0xb   :  { %227 = vsyncadd [#allocation8], 4294967232  ;;  %v232_v0 = vmov 0.0   ;;  %v46_v1 = vld [vmem:[#allocation4] sm:$0xf]  ;;  %vm66_vm0 = vcmask 1043456  }
   0xc   :  { %44 = vst [vmem:[#allocation2] sm:$0xf] %v232_v0  ;;  %v47_v2 = vld [vmem:[#allocation7] sm:$0xf]  ;;  %v48_v3 = vmul.f32 10.0, %v46_v1  ;;  %v233_v19 = vmov 512.0  }
   0xd   :  { %45 = vst [vmem:[#allocation3] sm:$0xf] %v232_v0  ;;  %v51_v4 = vmul.f32 10.0, %v47_v2  ;;  %s131_s27 = sshll.u32 %s261_s2, 4  ;;  %s234_s30 = smov [#allocation9]   ;;  %s132_s27 = int_to_ptr.hbm [resolvable:$true] %s131_s27 }
   0xe   :  { %156 = vlog2.f32 %v48_v3 }
   0xf   :  { %158 = vlog2.f32 %v51_v4 }
  0x10   :  { %160 = vrcp.f32 %v233_v19 }
  0x13   :  { %v55_v9 = vld [vmem:[#allocation2] sm:$0xf] }
  0x14   :  { %v157_v5 = vpop.eup %156  ;;  %v58_v11 = vld [vmem:[#allocation3] sm:$0xf] }
  0x15   :  { %v159_v6 = vpop.eup %158  ;;  %v50_v7 = vmul.f32 0.6931472, %v157_v5 }
  0x16   :  { %v53_v8 = vmul.f32 0.6931472, %v159_v6  ;;  %v161_v20 = vpop.eup %160 }
  0x17   :  { %v89_v24 = vmul.f32 512.0, %v161_v20  ;;  %vm93_vm1 = vweird.f32 %v161_v20 }
  0x18   :  { %v54_v10 = vsub.f32 %v50_v7, %v53_v8 }
  0x19   :  { %v90_v27 = vsub.f32 1.0, %v89_v24 }
  0x1a   :  { %v56_v12 = vadd.f32 %v55_v9, %v54_v10  ;;  %v59_v13 = vmul.f32 %v54_v10, %v54_v10 }
  0x1b   :  { %v91_v33 = vmul.f32 %v161_v20, %v90_v27 }
  0x1c   :  { %57 = vst [vmem:[#allocation2] sm:$0xf] %v56_v12  ;;  %v60_v14 = vadd.f32 %v59_v13, %v58_v11 }
  0x1d   :  { %v92_v36 = vadd.f32 %v161_v20, %v91_v33 }
  0x1e   :  { %61 = vst [vmem:[#allocation3] sm:$0xf] %v60_v14 }
  0x1f   :  { %v94_v39 = vsel %vm93_vm1, %v161_v20, %v92_v36 }
  0x23   :  { %v65_v15 = vld [vmem:[#allocation2] sm:$0xf] }
  0x24   :  { %v67_v16 = vsel %vm66_vm0, %v65_v15, 0.0 }
  0x25   :  { %68 = vadd.xlane.f32.xlu0 %v67_v16  ;;  %v77_v17 = vld [vmem:[#allocation3] sm:$0xf] }
  0x26   :  { %v78_v18 = vsel %vm66_vm0, %v77_v17, 0.0 }
  0x2d   :  { %79 = vadd.xlane.f32.xlu0 %v78_v18 }
  0x98   :  { %v69_v21 = vpop.xlane.xlu0 %68 }
  0x99   :  { %v70_v22 = vrot.slane %v69_v21, 4 }
  0x9b   :  { %v71_v23 = vadd.f32 %v70_v22, %v69_v21 }
  0x9d   :  { %v72_v25 = vrot.slane %v71_v23, 2 }
  0x9f   :  { %v73_v26 = vadd.f32 %v72_v25, %v71_v23 }
  0xa0   :  { %v80_v28 = vpop.xlane.xlu0 %79 }
  0xa1   :  { %v81_v29 = vrot.slane %v80_v28, 4  ;;  %v74_v30 = vrot.slane %v73_v26, 1 }
  0xa3   :  { %v82_v31 = vadd.f32 %v81_v29, %v80_v28  ;;  %v75_v32 = vadd.f32 %v74_v30, %v73_v26 }
  0xa5   :  { %v83_v34 = vrot.slane %v82_v31, 2  ;;  %143 = vpush %v75_v32 }
  0xa7   :  { %v84_v35 = vadd.f32 %v83_v34, %v82_v31 }
  0xa9   :  { %v85_v37 = vrot.slane %v84_v35, 1 }
  0xab   :  { %v86_v38 = vadd.f32 %v85_v37, %v84_v35 }
  0xad   :  { %145 = vpush %v86_v38 }
  0xae   :  { %147 = vpush %v94_v39 }
  0xd6   :  { %s144_s0 = spop %143 }
  0xde   :  { %s146_s1 = spop %145 }
  0xdf   :  { %s148_s19 = spop %147 }
  0xe0   :  { %s105_s20 = smul.f32 %s148_s19, %s144_s0 }
  0xe1   :  { %s96_s22 = smul.f32 %s148_s19, %s146_s1 }
  0xe2   :  { %s106_s21 = smul.f32 0.85, %s105_s20 }
  0xe4   :  { %s107_s23 = smul.f32 %s106_s21, %s105_s20 }
  0xe6   :  { %s108_s24 = ssub.f32 %s96_s22, %s107_s23 }
  0xe8   :  { %v109_v40 = vstv %s108_s24 }
  0xe9   :  { %162 = vrsqrt.f32 %v109_v40  ;;  %vm117_vm2 = vcmp.eq.f32.partialorder %v109_v40, inf  ;;  %v120_v48 = vand.u32 2147483648, %v109_v40  ;;  %vm119_vm3 = vcmp.eq.f32.partialorder %v109_v40, 0.0 }
  0xef   :  { %v163_v41 = vpop.eup %162 }
  0xf0   :  { %v111_v42 = vmul.f32 %v163_v41, %v109_v40 }
  0xf2   :  { %v112_v43 = vmul.f32 %v163_v41, %v111_v42 }
  0xf4   :  { %v113_v44 = vmul.f32 0.5, %v112_v43 }
  0xf6   :  { %v114_v45 = vsub.f32 1.5, %v113_v44 }
  0xf8   :  { %v115_v46 = vmul.f32 %v163_v41, %v114_v45 }
  0xfa   :  { %v116_v47 = vmul.f32 %v115_v46, %v109_v40 }
  0xfc   :  { %v118_v49 = vsel %vm117_vm2, %v109_v40, %v116_v47 }
  0xfd   :  { %v121_v50 = vsel %vm119_vm3, %v120_v48, %v118_v49 }
  0xfe   :  { %149 = vpush %v121_v50 }
 0x12f   :  { %s150_s28 = spop %149 }
 0x130   :  { %s123_s29 = smul.f32 10.0, %s150_s28 }
 0x132   :  { %125 = sst [smem:[#allocation9]] %s123_s29 }
 0x133   :  { %134 = dma.smem_to_hbm %s234_s30, 16, %s132_s27, [#allocation6]  }
 0x134   :  { %228 = dma.done.wait [#allocation6], 16  }
 0x135   :  { %229 = vsyncadd [#allocation6], 4294967280 }
 0x136   :  { %139 = sfence }
 0x137   :  { %140 = vsyncpa [#allocation5], 1 }
 0x138   :  { %141 = vsyncpa [#allocation8], 1 }
 0x139   :  { %142 = vsyncpa [#allocation6], 1 }

</bundles_post_ra>
